<compile_context>
chip_gen: v5e
topology: v5e:2x2
jax: 0.10.0
libtpu: 0.0.40
codegen_flags: <defaults>
</compile_context>

<pallas_src>
import functools

import jax
import jax.numpy as jnp
from jax.experimental import pallas as pl
from jax.experimental.pallas import tpu as pltpu

_COLS = 1024                      # lane-dense last dim (multiple of 128)
_FASTPATH_MAX_ELEMS = 64 * 1024   # below this, plain XLA sigmoid is faster


def _sigmoid_kernel(x_ref, o_ref):
    # sigmoid(x) == 0.5 * tanh(0.5 * x) + 0.5 : one EUP op + VPU FMA work.
    x = x_ref[...].astype(jnp.float32)
    o_ref[...] = (jnp.tanh(x * 0.5) * 0.5 + 0.5).astype(o_ref.dtype)


@functools.cache
def _max_block_rows() -> int:
    """Generation-aware cap on the row-tile (kept a multiple of 32)."""
    try:
        kind = jax.devices()[0].device_kind.lower()
    except Exception:
        return 512
    if "v6" in kind or "v7" in kind:
        # (1024, 1024) f32 = 4 MiB/buffer; 16 MiB with double-buffered in+out,
        # well inside the 32 MiB scoped-VMEM default of v6e / v7x.
        return 1024
    # v5e (16 MiB scoped-VMEM default) and anything unknown: 2 MiB/buffer.
    return 512


def _sigmoid_slab(x2d: jax.Array) -> jax.Array:
    """Run the Pallas sigmoid kernel on a lane-dense (rows, _COLS) slab."""
    rows, cols = x2d.shape
    assert cols == _COLS
    itemsize = jnp.dtype(x2d.dtype).itemsize
    sublane = max(8, 32 // itemsize)     # 8 for f32, 16 bf16, 32 int8/fp8

    # Cap block_rows at ~rows/2 (rounded to the sublane multiple) so the grid
    # has >= 2 iterations and both v7x TensorCores get work; harmless on
    # v5e/v6e (one extra ~0.35us step).
    half = pl.cdiv(rows, 2)
    block_rows = min(_max_block_rows(), ((half + sublane - 1) // sublane) * sublane)
    block_rows = max(block_rows, sublane)

    grid = (pl.cdiv(rows, block_rows),)  # partial last block: OOB writes discarded
    n = rows * _COLS

    return pl.pallas_call(
        _sigmoid_kernel,
        out_shape=jax.ShapeDtypeStruct((rows, _COLS), x2d.dtype),
        grid_spec=pltpu.PrefetchScalarGridSpec(
            num_scalar_prefetch=0,
            grid=grid,
            in_specs=[pl.BlockSpec((block_rows, _COLS), lambda i: (i, 0))],
            out_specs=pl.BlockSpec((block_rows, _COLS), lambda i: (i, 0)),
        ),
        compiler_params=pltpu.CompilerParams(
            # Independent row tiles shard across v7x's 2 TCs; no-op on v5e/v6e.
            dimension_semantics=(pltpu.PARALLEL,),
        ),
        cost_estimate=pl.CostEstimate(
            flops=4 * n, transcendentals=n, bytes_accessed=2 * n * itemsize),
    )(x2d)


def conductance_based_synapse(x: jax.Array) -> jax.Array:
    """Pallas implementation of F.sigmoid(x) for arbitrary-shaped input."""
    orig_shape = x.shape
    total = x.size
    if total == 0:
        return x
    if total < _FASTPATH_MAX_ELEMS:
        # Tiny tensors: pallas_call launch + wrapper plumbing dominates;
        # XLA's fused elementwise sigmoid is strictly faster here.
        return jax.nn.sigmoid(x)

    flat = x.reshape(-1)
    main = (total // _COLS) * _COLS
    tail = total - main

    if tail == 0:
        # Hot path: no pad, no slice -- exactly one read + one write of the data.
        out = _sigmoid_slab(flat.reshape(main // _COLS, _COLS))
        return out.reshape(orig_shape)

    # Ragged tail (< _COLS elements): Pallas kernel on the aligned prefix,
    # plain sigmoid on the tail.  The concatenate costs one extra pass but is
    # still cheaper than the old full-array pad + slice path.
    main_out = _sigmoid_slab(flat[:main].reshape(main // _COLS, _COLS)).reshape(-1)
    tail_out = jax.nn.sigmoid(flat[main:])
    return jnp.concatenate([main_out, tail_out]).reshape(orig_shape)


if __name__ == "__main__":
    key = jax.random.PRNGKey(0)
    k1, k2, k3 = jax.random.split(key, 3)

    # Small shape consistent with the module (takes the tiny-input fast path).
    x_small = jax.random.normal(k1, (2, 4, 16, 16), dtype=jnp.float32)
    # Larger inputs that exercise the Pallas kernel:
    #   aligned: 8*8*32*64 = 131072 = 128 * 1024   (no tail, grid of 2)
    #   ragged : 4*3*100*60 = 72000 = 70*1024 + 320 (partial last block + tail)
    x_aligned = jax.random.normal(k2, (8, 8, 32, 64), dtype=jnp.float32)
    x_ragged = jax.random.normal(k3, (4, 3, 100, 60), dtype=jnp.float32)

    for x in (x_small, x_aligned, x_ragged):
        out = jax.block_until_ready(conductance_based_synapse(x))
        ref = jax.nn.sigmoid(x)
        assert out.shape == x.shape and out.dtype == x.dtype
        assert jnp.allclose(out, ref, atol=5e-6, rtol=1e-5), float(
            jnp.max(jnp.abs(out - ref)))

    print("KERNEL_OK")
</pallas_src>

<mosaic_0001>
module attributes {stable_mosaic.version = 11 : i64} {
  func.func @_sigmoid_kernel(%arg0: i32, %arg1: memref<64x1024xf32, #tpu.memory_space<vmem>>, %arg2: memref<64x1024xf32, #tpu.memory_space<vmem>>) attributes {dimension_semantics = [#tpu.dimension_semantics<parallel>], iteration_bounds = array<i64: 2>, scalar_prefetch = 0 : i64, scratch_operands = 0 : i64, tpu.core_type = #tpu.core_type<tc>, window_params = [{transform_indices = @transform_0, window_bounds = array<i64: 64, 1024>}, {transform_indices = @transform_1, window_bounds = array<i64: 64, 1024>}]} {
    %c0 = arith.constant 0 : index
    %c0_0 = arith.constant 0 : index
    %0 = vector.load %arg1[%c0, %c0_0] : memref<64x1024xf32, #tpu.memory_space<vmem>>, vector<64x1024xf32>
    %cst = arith.constant 5.000000e-01 : f32
    %1 = vector.broadcast %cst : f32 to vector<64x1024xf32>
    %2 = arith.mulf %0, %1 : vector<64x1024xf32>
    %3 = math.tanh %2 : vector<64x1024xf32>
    %cst_1 = arith.constant 5.000000e-01 : f32
    %4 = vector.broadcast %cst_1 : f32 to vector<64x1024xf32>
    %5 = arith.mulf %3, %4 : vector<64x1024xf32>
    %cst_2 = arith.constant 5.000000e-01 : f32
    %6 = vector.broadcast %cst_2 : f32 to vector<64x1024xf32>
    %7 = arith.addf %5, %6 : vector<64x1024xf32>
    %c0_3 = arith.constant 0 : index
    %c0_4 = arith.constant 0 : index
    %8 = vector.load %arg2[%c0_3, %c0_4] : memref<64x1024xf32, #tpu.memory_space<vmem>>, vector<64x1024xf32>
    tpu.vector_store %arg2[%c0_3, %c0_4], %7 {strides = array<i32>} : memref<64x1024xf32, #tpu.memory_space<vmem>>, vector<64x1024xf32>,
    return
  }
  func.func @transform_0(%arg0: i32) -> (i32, i32) {
    %c0_i32 = arith.constant 0 : i32
    %c0_i32_0 = arith.constant 0 : i32
    return %arg0, %c0_i32 : i32, i32
  }
  func.func @transform_1(%arg0: i32) -> (i32, i32) {
    %c0_i32 = arith.constant 0 : i32
    %c0_i32_0 = arith.constant 0 : i32
    return %arg0, %c0_i32 : i32, i32
  }
}

</mosaic_0001>

<bundles_post_ra>
// kernel: tpu_custom_call.1
= control target key start
LH: loop header
LB: loop body
LE: loop exit
PB: predicated region body
PF: predicated region fallthrough
CT: control target
= control target key end

     0   :  { %6 = vsyncpa [#allocation3], 0  ;;  %s1188_s0 = inlined_call_operand.hbm [shape: f32[128,1024], index: 0, kind: input, shape index: {}]   ;;  %s1189_s1 = inlined_call_operand.hbm [shape: f32[128,1024], index: 1, kind: output, shape index: {}]  }
   0x1   :  { %8 = vsyncpa [#allocation3 + $0x1], 0 }
   0x2   :  { %9 = vsyncpa [#allocation4], 0 }
   0x3   :  { %11 = vsyncpa [#allocation4 + $0x1], 0  ;;  %s924_s6 = smov 0   ;;  %s926_s7 = smov 0  }
   0x4   :  { %s928_s8 = smov 0   ;;  %s930_s9 = smov 0  }
   0x5 LB: > { %s945_s10 = sadd.s32 4294967295, %s908_s9   ;;  %s614_s11 = sadd.s32 4294967294, %s908_s9   ;;  %s908_s9 = sphi %s930_s9, %s1199_s9   ;;  %s904_s8 = sphi %s928_s8, %s1198_s8   ;;  %s900_s7 = sphi %s926_s7, %s1197_s7   ;;  %s896_s6 = sphi %s924_s6, %s1196_s6  }
   0x6   : > { %s949_s12 = sadd.s32 1, %s908_s9   ;;  %s24_s13 = sadd.s32 1, %s904_s8 }
   0x7   : > { %s21_s14 = ssub.s32 %s908_s9, %s949_s12  ;;  %p31_p0 = scmp.ne.s32.totalorder %s904_s8, %s900_s7 }
   0x8   : > { %p22_p1 = scmp.eq.s32.totalorder %s21_s14, 0  ;;  %p32_p2 = scmp.eq.s32.totalorder %s908_s9, 0 }
   0x9   : > { %p37_p3 = scmp.ne.s32.totalorder %s900_s7, %s896_s6  ;;  %p38_p4 = scmp.eq.s32.totalorder %s945_s10, 0 }
   0xa   : > { %s961_s15 = scalar_select %p22_p1, %s904_s8, %s24_s13  }
   0xb   : > { %p963_p5 = por %p32_p2, %p31_p0  ;;  %p967_p6 = por %p38_p4, %p37_p3 }
   0xc   : > { %p61_p7 = scmp.eq.s32.totalorder %s945_s10, 1  ;;  %p67_p8 = scmp.eq.s32.totalorder %s614_s11, 1 }
   0xd   : > { %p646_p10 = scmp.lt.s32.totalorder %s908_s9, 2  ;;  %s87_s20 = sand.u32 1, %s904_s8  }
   0xe   : > { %p974_p11 = por %p61_p7, %p31_p0  ;;  %p978_p12 = por %p67_p8, %p37_p3 }
   0xf   : > { %s631_s21 = sshll.u32 %s908_s9, 9  ;;  %s617_s22 = sshll.u32 %s87_s20, 9 }
  0x10   : > { %s97_s25 = scalar_lea.hbm %s1188_s0, %s631_s21  ;;  %s91_s27 = scalar_lea.vmem [#allocation2], %s617_s22 }
  0x11   : > { %s98_s26 = sshll.u32 %s97_s25, 4  ;;  %s100_s28 = sshll.u32 %s91_s27, 4  ;;  %s99_s26 = int_to_ptr.hbm [resolvable:$true] %s98_s26  ;;  %s101_s28 = int_to_ptr.vmem [resolvable:$true] %s100_s28 }
  0x12   : > { %p989_p13 = pnand %p646_p10, %p963_p5  ;;  %p621_p0 = scmp.ge.s32.totalorder %s908_s9, 1 }
  0x13   : > { %p108_p1 = scmp.lt.s32.totalorder %s908_s9, 3  ;;  %s88_s30 = scalar_lea.sflag [#allocation3], %s87_s20 }
  0x14   : > { %s812_s2 = sshra.s32 %s99_s26, 4  ;;  %p816_p3 = pneg %p989_p13  ;;  %s813_s2 = int_to_ptr.hbm [resolvable:$true] %s812_s2 }
  0x15   : > { %s814_s3 = scalar_lea.hbm %s813_s2, 512  ;;  %s819_s11 = scalar_lea.hbm %s1188_s0, 1024 }
  0x16   : > { %p815_p2 = scmp.ne.s32.totalorder %s813_s2, %s814_s3  ;;  %p820_p5 = scmp.lt.s32.totalorder %s813_s2, %s1188_s0 }
  0x17   : > { %p821_p8 = scmp.lt.s32.totalorder %s819_s11, %s814_s3 }
  0x18   : > { %p817_p4 = pnand %p816_p3, %p815_p2 }
  0x19   : > { %p822_p10 = por %p821_p8, %p820_p5 }
  0x1a   : > { %p818_p7 = pneg %p817_p4 }
  0x1c   : > { %p823_p9 = pnand %p822_p10, %p818_p7 }
  0x1e   : > { %826 = shalt.err (!%p823_p9)
}
  0x1f   : > { %s910_s16 = smov 1024   ;;  %s911_s20 = smov 64  }
  0x20   : > { %641 = dma.hbm_to_vmem [thread:$0]  (!%p989_p13), %s99_s26, 8192, %s101_s28, %s88_s30, %s910_s16, %s910_s16, %s911_s20  }
  0x21   : > { %p109_p2 = pnand %p621_p0, %p108_p1 }
  0x22   : > { %s1010_s21 = sand.u32 (!%p109_p2), 1, %s900_s7  }
  0x23   : > { %112 = sbr.rel (%p109_p2) target bundleno = 122 (0x7a), region = 24  ;;  %s622_s22 = sshll.u32 (!%p109_p2), %s1010_s21, 9 }
  0x24   : > { %s115_s23 = scalar_lea.sflag (!%p109_p2), [#allocation3], %s1010_s21  ;;  %s1016_s24 = scalar_lea.vmem (!%p109_p2), [#allocation2], %s622_s22 }
  0x28   : > { %887 = dma.done.wait (%p967_p6), %s115_s23, 8192  }
  0x29   : > { %889 = vsyncadd (%p967_p6), %s115_s23, 4294959104  ;;  %v140_v0 = vld [vmem:[%s1016_s24] sm:$0xff]  ;;  %v141_v1 = vld [vmem:[%s1016_s24 + $0x8] sm:$0xff]  ;;  %s1042_s17 = scalar_lea.vmem [#allocation5], %s622_s22  ;;  %s633_s25 = sshll.u32 %s945_s10, 9 }
  0x2a   : > { %v142_v2 = vld [vmem:[%s1016_s24 + $0x10] sm:$0xff]  ;;  %v204_v3 = vmul.f32 0.5, %v140_v0  ;;  %v205_v4 = vmul.f32 0.5, %v141_v1  ;;  %v143_v6 = vld [vmem:[%s1016_s24 + $0x18] sm:$0xff]  ;;  %v144_v7 = vld [vmem:[%s1016_s24 + $0x20] sm:$0xff]  ;;  %s537_s10 = scalar_lea.hbm %s1189_s1, %s633_s25  ;;  %s538_s28 = sshll.u32 %s1042_s17, 4  ;;  %s539_s28 = int_to_ptr.vmem [resolvable:$true] %s538_s28 }
  0x2b   : > { %v206_v5 = vmul.f32 0.5, %v142_v2  ;;  %v145_v8 = vld [vmem:[%s1016_s24 + $0x28] sm:$0xff]  ;;  %v207_v9 = vmul.f32 0.5, %v143_v6  ;;  %v146_v10 = vld [vmem:[%s1016_s24 + $0x30] sm:$0xff]  ;;  %v208_v11 = vmul.f32 0.5, %v144_v7  ;;  %v147_v12 = vld [vmem:[%s1016_s24 + $0x38] sm:$0xff] }
  0x2c   : > { %684 = vtanh.f32 %v204_v3  ;;  %v209_v13 = vmul.f32 0.5, %v145_v8  ;;  %v148_v14 = vld [vmem:[%s1016_s24 + $0x40] sm:$0xff]  ;;  %v210_v15 = vmul.f32 0.5, %v146_v10  ;;  %v149_v16 = vld [vmem:[%s1016_s24 + $0x48] sm:$0xff]  ;;  %v211_v17 = vmul.f32 0.5, %v147_v12  ;;  %v150_v18 = vld [vmem:[%s1016_s24 + $0x50] sm:$0xff] }
  0x2d   : > { %686 = vtanh.f32 %v205_v4  ;;  %v212_v19 = vmul.f32 0.5, %v148_v14  ;;  %v151_v20 = vld [vmem:[%s1016_s24 + $0x58] sm:$0xff]  ;;  %v213_v21 = vmul.f32 0.5, %v149_v16  ;;  %v152_v22 = vld [vmem:[%s1016_s24 + $0x60] sm:$0xff]  ;;  %v214_v24 = vmul.f32 0.5, %v150_v18  ;;  %v153_v25 = vld [vmem:[%s1016_s24 + $0x68] sm:$0xff] }
  0x2e   : > { %688 = vtanh.f32 %v206_v5  ;;  %v215_v28 = vmul.f32 0.5, %v151_v20  ;;  %v154_v29 = vld [vmem:[%s1016_s24 + $0x70] sm:$0xff]  ;;  %v216_v32 = vmul.f32 0.5, %v152_v22  ;;  %v155_v33 = vld [vmem:[%s1016_s24 + $0x78] sm:$0xff]  ;;  %v217_v37 = vmul.f32 0.5, %v153_v25  ;;  %v156_v38 = vld [vmem:[%s1016_s24 + $0x80] sm:$0xff] }
  0x2f   : > { %690 = vtanh.f32 %v207_v9  ;;  %v218_v42 = vmul.f32 0.5, %v154_v29  ;;  %v157_v43 = vld [vmem:[%s1016_s24 + $0x88] sm:$0xff]  ;;  %v219_v47 = vmul.f32 0.5, %v155_v33  ;;  %v158_v48 = vld [vmem:[%s1016_s24 + $0x90] sm:$0xff]  ;;  %v220_v52 = vmul.f32 0.5, %v156_v38  ;;  %v159_v53 = vld [vmem:[%s1016_s24 + $0x98] sm:$0xff] }
  0x30   : > { %692 = vtanh.f32 %v208_v11  ;;  %v221_v57 = vmul.f32 0.5, %v157_v43  ;;  %v160_v58 = vld [vmem:[%s1016_s24 + $0xa0] sm:$0xff]  ;;  %v222_v62 = vmul.f32 0.5, %v158_v48  ;;  %v161_v63 = vld [vmem:[%s1016_s24 + $0xa8] sm:$0xff]  ;;  %v223_v3 = vmul.f32 0.5, %v159_v53  ;;  %v162_v4 = vld [vmem:[%s1016_s24 + $0xb0] sm:$0xff] }
  0x31   : > { %694 = vtanh.f32 %v209_v13  ;;  %v224_v8 = vmul.f32 0.5, %v160_v58  ;;  %v163_v9 = vld [vmem:[%s1016_s24 + $0xb8] sm:$0xff]  ;;  %v225_v13 = vmul.f32 0.5, %v161_v63  ;;  %v164_v14 = vld [vmem:[%s1016_s24 + $0xc0] sm:$0xff]  ;;  %v226_v18 = vmul.f32 0.5, %v162_v4  ;;  %s540_s29 = sshll.u32 %s537_s10, 4  ;;  %s541_s29 = int_to_ptr.hbm [resolvable:$true] %s540_s29 }
  0x32   : > { %v685_v23 = vpop.eup %684  ;;  %696 = vtanh.f32 %v210_v15  ;;  %v167_v29 = vld [vmem:[%s1016_s24 + $0xd8] sm:$0xff]  ;;  %s525_s30 = scalar_lea.sflag [#allocation4], %s1010_s21  ;;  %s856_s2 = sshra.s32 %s541_s29, 4  ;;  %s857_s2 = int_to_ptr.hbm [resolvable:$true] %s856_s2 }
  0x33   : > { %v687_v26 = vpop.eup %686  ;;  %v332_v27 = vmul.f32 0.5, %v685_v23  ;;  %698 = vtanh.f32 %v211_v17  ;;  %v227_v23 = vmul.f32 0.5, %v163_v9  ;;  %v231_v43 = vmul.f32 0.5, %v167_v29  ;;  %s858_s3 = scalar_lea.hbm %s857_s2, 512  ;;  %s862_s11 = scalar_lea.hbm %s1189_s1, 1024 }
  0x34   : > { %v689_v30 = vpop.eup %688  ;;  %v333_v31 = vmul.f32 0.5, %v687_v26  ;;  %700 = vtanh.f32 %v212_v19  ;;  %v165_v19 = vld [vmem:[%s1016_s24 + $0xc8] sm:$0xff]  ;;  %p859_p6 = scmp.ne.s32.totalorder %s857_s2, %s858_s3  ;;  %p863_p0 = scmp.lt.s32.totalorder %s857_s2, %s1189_s1 }
  0x35   : > { %v691_v34 = vpop.eup %690  ;;  %v396_v35 = vadd.f32 0.5, %v332_v27  ;;  %v334_v36 = vmul.f32 0.5, %v689_v30  ;;  %702 = vtanh.f32 %v213_v21  ;;  %v229_v33 = vmul.f32 0.5, %v165_v19  ;;  %p864_p1 = scmp.lt.s32.totalorder %s862_s11, %s858_s3 }
  0x36   : > { %v693_v39 = vpop.eup %692  ;;  %v397_v40 = vadd.f32 0.5, %v333_v31  ;;  %v335_v41 = vmul.f32 0.5, %v691_v34  ;;  %704 = vtanh.f32 %v214_v24  ;;  %v166_v24 = vld [vmem:[%s1016_s24 + $0xd0] sm:$0xff]  ;;  %v168_v34 = vld [vmem:[%s1016_s24 + $0xe0] sm:$0xff]  ;;  %p860_p9 = pnand %p859_p6, %p974_p11 }
  0x37   : > { %v695_v44 = vpop.eup %694  ;;  %460 = vst [vmem:[%s1042_s17] sm:$0xff] %v396_v35  ;;  %v398_v45 = vadd.f32 0.5, %v334_v36  ;;  %v336_v46 = vmul.f32 0.5, %v693_v39  ;;  %706 = vtanh.f32 %v215_v28  ;;  %v228_v28 = vmul.f32 0.5, %v164_v14  ;;  %v169_v39 = vld [vmem:[%s1016_s24 + $0xe8] sm:$0xff]  ;;  %p865_p3 = por %p864_p1, %p863_p0 }
  0x38   : > { %v697_v49 = vpop.eup %696  ;;  %461 = vst [vmem:[%s1042_s17 + $0x8] sm:$0xff] %v397_v40  ;;  %v399_v50 = vadd.f32 0.5, %v335_v41  ;;  %v337_v51 = vmul.f32 0.5, %v695_v44  ;;  %708 = vtanh.f32 %v216_v32  ;;  %v230_v38 = vmul.f32 0.5, %v166_v24  ;;  %v170_v44 = vld [vmem:[%s1016_s24 + $0xf0] sm:$0xff]  ;;  %p861_p13 = pneg %p860_p9 }
  0x39   : > { %v699_v54 = vpop.eup %698  ;;  %462 = vst [vmem:[%s1042_s17 + $0x10] sm:$0xff] %v398_v45  ;;  %v400_v55 = vadd.f32 0.5, %v336_v46  ;;  %v338_v56 = vmul.f32 0.5, %v697_v49  ;;  %710 = vtanh.f32 %v217_v37  ;;  %v232_v48 = vmul.f32 0.5, %v168_v34  ;;  %v171_v49 = vld [vmem:[%s1016_s24 + $0xf8] sm:$0xff] }
  0x3a   : > { %v701_v59 = vpop.eup %700  ;;  %463 = vst [vmem:[%s1042_s17 + $0x18] sm:$0xff] %v399_v50  ;;  %v401_v60 = vadd.f32 0.5, %v337_v51  ;;  %v339_v61 = vmul.f32 0.5, %v699_v54  ;;  %712 = vtanh.f32 %v218_v42  ;;  %v233_v53 = vmul.f32 0.5, %v169_v39  ;;  %v172_v54 = vld [vmem:[%s1016_s24 + $0x100] sm:$0xff]  ;;  %p866_p4 = pnand %p865_p3, %p861_p13 }
  0x3b   : > { %v703_v0 = vpop.eup %702  ;;  %464 = vst [vmem:[%s1042_s17 + $0x20] sm:$0xff] %v400_v55  ;;  %v402_v1 = vadd.f32 0.5, %v338_v56  ;;  %v340_v2 = vmul.f32 0.5, %v701_v59  ;;  %714 = vtanh.f32 %v219_v47  ;;  %v234_v58 = vmul.f32 0.5, %v170_v44  ;;  %v173_v59 = vld [vmem:[%s1016_s24 + $0x108] sm:$0xff] }
  0x3c   : > { %v705_v5 = vpop.eup %704  ;;  %465 = vst [vmem:[%s1042_s17 + $0x28] sm:$0xff] %v401_v60  ;;  %v403_v6 = vadd.f32 0.5, %v339_v61  ;;  %v341_v7 = vmul.f32 0.5, %v703_v0  ;;  %716 = vtanh.f32 %v220_v52  ;;  %v235_v63 = vmul.f32 0.5, %v171_v49  ;;  %v174_v0 = vld [vmem:[%s1016_s24 + $0x110] sm:$0xff] }
  0x3d   : > { %v707_v10 = vpop.eup %706  ;;  %466 = vst [vmem:[%s1042_s17 + $0x30] sm:$0xff] %v402_v1  ;;  %v404_v11 = vadd.f32 0.5, %v340_v2  ;;  %v342_v12 = vmul.f32 0.5, %v705_v5  ;;  %718 = vtanh.f32 %v221_v57  ;;  %v236_v4 = vmul.f32 0.5, %v172_v54  ;;  %v175_v5 = vld [vmem:[%s1016_s24 + $0x118] sm:$0xff] }
  0x3e   : > { %v709_v15 = vpop.eup %708  ;;  %467 = vst [vmem:[%s1042_s17 + $0x38] sm:$0xff] %v403_v6  ;;  %v405_v16 = vadd.f32 0.5, %v341_v7  ;;  %v343_v17 = vmul.f32 0.5, %v707_v10  ;;  %720 = vtanh.f32 %v222_v62  ;;  %v237_v9 = vmul.f32 0.5, %v173_v59  ;;  %v176_v10 = vld [vmem:[%s1016_s24 + $0x120] sm:$0xff] }
  0x3f   : > { %v711_v20 = vpop.eup %710  ;;  %468 = vst [vmem:[%s1042_s17 + $0x40] sm:$0xff] %v404_v11  ;;  %v406_v21 = vadd.f32 0.5, %v342_v12  ;;  %v344_v22 = vmul.f32 0.5, %v709_v15  ;;  %722 = vtanh.f32 %v223_v3  ;;  %v238_v14 = vmul.f32 0.5, %v174_v0  ;;  %v177_v15 = vld [vmem:[%s1016_s24 + $0x128] sm:$0xff] }
  0x40   : > { %v713_v25 = vpop.eup %712  ;;  %469 = vst [vmem:[%s1042_s17 + $0x48] sm:$0xff] %v405_v16  ;;  %v407_v26 = vadd.f32 0.5, %v343_v17  ;;  %v345_v27 = vmul.f32 0.5, %v711_v20  ;;  %724 = vtanh.f32 %v224_v8  ;;  %v239_v19 = vmul.f32 0.5, %v175_v5  ;;  %v178_v20 = vld [vmem:[%s1016_s24 + $0x130] sm:$0xff] }
  0x41   : > { %v715_v30 = vpop.eup %714  ;;  %470 = vst [vmem:[%s1042_s17 + $0x50] sm:$0xff] %v406_v21  ;;  %v408_v31 = vadd.f32 0.5, %v344_v22  ;;  %v346_v32 = vmul.f32 0.5, %v713_v25  ;;  %726 = vtanh.f32 %v225_v13  ;;  %v240_v24 = vmul.f32 0.5, %v176_v10  ;;  %v179_v25 = vld [vmem:[%s1016_s24 + $0x138] sm:$0xff] }
  0x42   : > { %v717_v35 = vpop.eup %716  ;;  %471 = vst [vmem:[%s1042_s17 + $0x58] sm:$0xff] %v407_v26  ;;  %v409_v36 = vadd.f32 0.5, %v345_v27  ;;  %v347_v37 = vmul.f32 0.5, %v715_v30  ;;  %728 = vtanh.f32 %v226_v18  ;;  %v241_v29 = vmul.f32 0.5, %v177_v15  ;;  %v180_v30 = vld [vmem:[%s1016_s24 + $0x140] sm:$0xff] }
  0x43   : > { %v719_v40 = vpop.eup %718  ;;  %472 = vst [vmem:[%s1042_s17 + $0x60] sm:$0xff] %v408_v31  ;;  %v410_v41 = vadd.f32 0.5, %v346_v32  ;;  %v348_v42 = vmul.f32 0.5, %v717_v35  ;;  %730 = vtanh.f32 %v227_v23  ;;  %v242_v34 = vmul.f32 0.5, %v178_v20  ;;  %v181_v35 = vld [vmem:[%s1016_s24 + $0x148] sm:$0xff] }
  0x44   : > { %v721_v45 = vpop.eup %720  ;;  %473 = vst [vmem:[%s1042_s17 + $0x68] sm:$0xff] %v409_v36  ;;  %v411_v46 = vadd.f32 0.5, %v347_v37  ;;  %v349_v47 = vmul.f32 0.5, %v719_v40  ;;  %732 = vtanh.f32 %v228_v28  ;;  %v243_v39 = vmul.f32 0.5, %v179_v25  ;;  %v182_v40 = vld [vmem:[%s1016_s24 + $0x150] sm:$0xff] }
  0x45   : > { %v723_v50 = vpop.eup %722  ;;  %474 = vst [vmem:[%s1042_s17 + $0x70] sm:$0xff] %v410_v41  ;;  %v412_v51 = vadd.f32 0.5, %v348_v42  ;;  %v350_v52 = vmul.f32 0.5, %v721_v45  ;;  %734 = vtanh.f32 %v229_v33  ;;  %v244_v44 = vmul.f32 0.5, %v180_v30  ;;  %v183_v45 = vld [vmem:[%s1016_s24 + $0x158] sm:$0xff] }
  0x46   : > { %v725_v55 = vpop.eup %724  ;;  %475 = vst [vmem:[%s1042_s17 + $0x78] sm:$0xff] %v411_v46  ;;  %v413_v56 = vadd.f32 0.5, %v349_v47  ;;  %v351_v57 = vmul.f32 0.5, %v723_v50  ;;  %736 = vtanh.f32 %v230_v38  ;;  %v245_v49 = vmul.f32 0.5, %v181_v35  ;;  %v184_v50 = vld [vmem:[%s1016_s24 + $0x160] sm:$0xff] }
  0x47   : > { %v727_v60 = vpop.eup %726  ;;  %476 = vst [vmem:[%s1042_s17 + $0x80] sm:$0xff] %v412_v51  ;;  %v414_v61 = vadd.f32 0.5, %v350_v52  ;;  %v352_v62 = vmul.f32 0.5, %v725_v55  ;;  %738 = vtanh.f32 %v231_v43  ;;  %v246_v54 = vmul.f32 0.5, %v182_v40  ;;  %v185_v55 = vld [vmem:[%s1016_s24 + $0x168] sm:$0xff] }
  0x48   : > { %v729_v1 = vpop.eup %728  ;;  %477 = vst [vmem:[%s1042_s17 + $0x88] sm:$0xff] %v413_v56  ;;  %v415_v2 = vadd.f32 0.5, %v351_v57  ;;  %v353_v3 = vmul.f32 0.5, %v727_v60  ;;  %740 = vtanh.f32 %v232_v48  ;;  %v247_v59 = vmul.f32 0.5, %v183_v45  ;;  %v186_v60 = vld [vmem:[%s1016_s24 + $0x170] sm:$0xff] }
  0x49   : > { %v731_v6 = vpop.eup %730  ;;  %478 = vst [vmem:[%s1042_s17 + $0x90] sm:$0xff] %v414_v61  ;;  %v416_v7 = vadd.f32 0.5, %v352_v62  ;;  %v354_v8 = vmul.f32 0.5, %v729_v1  ;;  %742 = vtanh.f32 %v233_v53  ;;  %v248_v0 = vmul.f32 0.5, %v184_v50  ;;  %v187_v1 = vld [vmem:[%s1016_s24 + $0x178] sm:$0xff] }
  0x4a   : > { %v733_v11 = vpop.eup %732  ;;  %479 = vst [vmem:[%s1042_s17 + $0x98] sm:$0xff] %v415_v2  ;;  %v417_v12 = vadd.f32 0.5, %v353_v3  ;;  %v355_v13 = vmul.f32 0.5, %v731_v6  ;;  %744 = vtanh.f32 %v234_v58  ;;  %v249_v5 = vmul.f32 0.5, %v185_v55  ;;  %v188_v6 = vld [vmem:[%s1016_s24 + $0x180] sm:$0xff] }
  0x4b   : > { %v735_v16 = vpop.eup %734  ;;  %480 = vst [vmem:[%s1042_s17 + $0xa0] sm:$0xff] %v416_v7  ;;  %v418_v17 = vadd.f32 0.5, %v354_v8  ;;  %v356_v18 = vmul.f32 0.5, %v733_v11  ;;  %746 = vtanh.f32 %v235_v63  ;;  %v250_v10 = vmul.f32 0.5, %v186_v60  ;;  %v189_v11 = vld [vmem:[%s1016_s24 + $0x188] sm:$0xff] }
  0x4c   : > { %v737_v21 = vpop.eup %736  ;;  %481 = vst [vmem:[%s1042_s17 + $0xa8] sm:$0xff] %v417_v12  ;;  %v419_v22 = vadd.f32 0.5, %v355_v13  ;;  %v357_v23 = vmul.f32 0.5, %v735_v16  ;;  %748 = vtanh.f32 %v236_v4  ;;  %v251_v15 = vmul.f32 0.5, %v187_v1  ;;  %v190_v16 = vld [vmem:[%s1016_s24 + $0x190] sm:$0xff] }
  0x4d   : > { %v739_v26 = vpop.eup %738  ;;  %482 = vst [vmem:[%s1042_s17 + $0xb0] sm:$0xff] %v418_v17  ;;  %v420_v27 = vadd.f32 0.5, %v356_v18  ;;  %v358_v28 = vmul.f32 0.5, %v737_v21  ;;  %750 = vtanh.f32 %v237_v9  ;;  %v252_v20 = vmul.f32 0.5, %v188_v6  ;;  %v191_v21 = vld [vmem:[%s1016_s24 + $0x198] sm:$0xff] }
  0x4e   : > { %v741_v31 = vpop.eup %740  ;;  %483 = vst [vmem:[%s1042_s17 + $0xb8] sm:$0xff] %v419_v22  ;;  %v421_v32 = vadd.f32 0.5, %v357_v23  ;;  %v359_v33 = vmul.f32 0.5, %v739_v26  ;;  %752 = vtanh.f32 %v238_v14  ;;  %v253_v25 = vmul.f32 0.5, %v189_v11  ;;  %v192_v26 = vld [vmem:[%s1016_s24 + $0x1a0] sm:$0xff] }
  0x4f   : > { %v743_v36 = vpop.eup %742  ;;  %484 = vst [vmem:[%s1042_s17 + $0xc0] sm:$0xff] %v420_v27  ;;  %v422_v37 = vadd.f32 0.5, %v358_v28  ;;  %v360_v38 = vmul.f32 0.5, %v741_v31  ;;  %754 = vtanh.f32 %v239_v19  ;;  %v254_v30 = vmul.f32 0.5, %v190_v16  ;;  %v193_v31 = vld [vmem:[%s1016_s24 + $0x1a8] sm:$0xff] }
  0x50   : > { %v745_v41 = vpop.eup %744  ;;  %485 = vst [vmem:[%s1042_s17 + $0xc8] sm:$0xff] %v421_v32  ;;  %v423_v42 = vadd.f32 0.5, %v359_v33  ;;  %v361_v43 = vmul.f32 0.5, %v743_v36  ;;  %756 = vtanh.f32 %v240_v24  ;;  %v255_v35 = vmul.f32 0.5, %v191_v21  ;;  %v194_v36 = vld [vmem:[%s1016_s24 + $0x1b0] sm:$0xff] }
  0x51   : > { %v747_v46 = vpop.eup %746  ;;  %486 = vst [vmem:[%s1042_s17 + $0xd0] sm:$0xff] %v422_v37  ;;  %v424_v47 = vadd.f32 0.5, %v360_v38  ;;  %v362_v48 = vmul.f32 0.5, %v745_v41  ;;  %758 = vtanh.f32 %v241_v29  ;;  %v256_v40 = vmul.f32 0.5, %v192_v26  ;;  %v195_v41 = vld [vmem:[%s1016_s24 + $0x1b8] sm:$0xff] }
  0x52   : > { %v749_v51 = vpop.eup %748  ;;  %487 = vst [vmem:[%s1042_s17 + $0xd8] sm:$0xff] %v423_v42  ;;  %v425_v52 = vadd.f32 0.5, %v361_v43  ;;  %v363_v53 = vmul.f32 0.5, %v747_v46  ;;  %760 = vtanh.f32 %v242_v34  ;;  %v257_v45 = vmul.f32 0.5, %v193_v31  ;;  %v196_v46 = vld [vmem:[%s1016_s24 + $0x1c0] sm:$0xff] }
  0x53   : > { %v751_v56 = vpop.eup %750  ;;  %488 = vst [vmem:[%s1042_s17 + $0xe0] sm:$0xff] %v424_v47  ;;  %v426_v57 = vadd.f32 0.5, %v362_v48  ;;  %v364_v58 = vmul.f32 0.5, %v749_v51  ;;  %762 = vtanh.f32 %v243_v39  ;;  %v258_v50 = vmul.f32 0.5, %v194_v36  ;;  %v197_v51 = vld [vmem:[%s1016_s24 + $0x1c8] sm:$0xff] }
  0x54   : > { %v753_v61 = vpop.eup %752  ;;  %489 = vst [vmem:[%s1042_s17 + $0xe8] sm:$0xff] %v425_v52  ;;  %v427_v62 = vadd.f32 0.5, %v363_v53  ;;  %v365_v63 = vmul.f32 0.5, %v751_v56  ;;  %764 = vtanh.f32 %v244_v44  ;;  %v259_v55 = vmul.f32 0.5, %v195_v41  ;;  %v198_v56 = vld [vmem:[%s1016_s24 + $0x1d0] sm:$0xff] }
  0x55   : > { %v755_v2 = vpop.eup %754  ;;  %490 = vst [vmem:[%s1042_s17 + $0xf0] sm:$0xff] %v426_v57  ;;  %v428_v3 = vadd.f32 0.5, %v364_v58  ;;  %v366_v4 = vmul.f32 0.5, %v753_v61  ;;  %766 = vtanh.f32 %v245_v49  ;;  %v260_v60 = vmul.f32 0.5, %v196_v46  ;;  %v199_v61 = vld [vmem:[%s1016_s24 + $0x1d8] sm:$0xff] }
  0x56   : > { %v757_v7 = vpop.eup %756  ;;  %491 = vst [vmem:[%s1042_s17 + $0xf8] sm:$0xff] %v427_v62  ;;  %v429_v8 = vadd.f32 0.5, %v365_v63  ;;  %v367_v9 = vmul.f32 0.5, %v755_v2  ;;  %768 = vtanh.f32 %v246_v54  ;;  %v261_v1 = vmul.f32 0.5, %v197_v51  ;;  %v200_v2 = vld [vmem:[%s1016_s24 + $0x1e0] sm:$0xff] }
  0x57   : > { %v759_v12 = vpop.eup %758  ;;  %492 = vst [vmem:[%s1042_s17 + $0x100] sm:$0xff] %v428_v3  ;;  %v430_v13 = vadd.f32 0.5, %v366_v4  ;;  %v368_v14 = vmul.f32 0.5, %v757_v7  ;;  %770 = vtanh.f32 %v247_v59  ;;  %v262_v6 = vmul.f32 0.5, %v198_v56  ;;  %v201_v7 = vld [vmem:[%s1016_s24 + $0x1e8] sm:$0xff] }
  0x58   : > { %v761_v17 = vpop.eup %760  ;;  %493 = vst [vmem:[%s1042_s17 + $0x108] sm:$0xff] %v429_v8  ;;  %v431_v18 = vadd.f32 0.5, %v367_v9  ;;  %v369_v19 = vmul.f32 0.5, %v759_v12  ;;  %772 = vtanh.f32 %v248_v0  ;;  %v263_v11 = vmul.f32 0.5, %v199_v61  ;;  %v202_v12 = vld [vmem:[%s1016_s24 + $0x1f0] sm:$0xff] }
  0x59   : > { %v763_v22 = vpop.eup %762  ;;  %494 = vst [vmem:[%s1042_s17 + $0x110] sm:$0xff] %v430_v13  ;;  %v432_v23 = vadd.f32 0.5, %v368_v14  ;;  %v370_v24 = vmul.f32 0.5, %v761_v17  ;;  %774 = vtanh.f32 %v249_v5  ;;  %v264_v16 = vmul.f32 0.5, %v200_v2  ;;  %v203_v17 = vld [vmem:[%s1016_s24 + $0x1f8] sm:$0xff] }
  0x5a   : > { %v765_v27 = vpop.eup %764  ;;  %495 = vst [vmem:[%s1042_s17 + $0x118] sm:$0xff] %v431_v18  ;;  %v433_v28 = vadd.f32 0.5, %v369_v19  ;;  %v371_v29 = vmul.f32 0.5, %v763_v22  ;;  %776 = vtanh.f32 %v250_v10  ;;  %v265_v21 = vmul.f32 0.5, %v201_v7 }
  0x5b   : > { %v767_v32 = vpop.eup %766  ;;  %496 = vst [vmem:[%s1042_s17 + $0x120] sm:$0xff] %v432_v23  ;;  %v434_v33 = vadd.f32 0.5, %v370_v24  ;;  %v372_v34 = vmul.f32 0.5, %v765_v27  ;;  %778 = vtanh.f32 %v251_v15 }
  0x5c   : > { %v769_v37 = vpop.eup %768  ;;  %497 = vst [vmem:[%s1042_s17 + $0x128] sm:$0xff] %v433_v28  ;;  %v435_v38 = vadd.f32 0.5, %v371_v29  ;;  %v373_v39 = vmul.f32 0.5, %v767_v32  ;;  %780 = vtanh.f32 %v252_v20  ;;  %v267_v29 = vmul.f32 0.5, %v203_v17 }
  0x5d   : > { %v771_v42 = vpop.eup %770  ;;  %498 = vst [vmem:[%s1042_s17 + $0x130] sm:$0xff] %v434_v33  ;;  %v436_v43 = vadd.f32 0.5, %v372_v34  ;;  %v374_v44 = vmul.f32 0.5, %v769_v37  ;;  %782 = vtanh.f32 %v253_v25  ;;  %v266_v25 = vmul.f32 0.5, %v202_v12 }
  0x5e   : > { %v773_v47 = vpop.eup %772  ;;  %499 = vst [vmem:[%s1042_s17 + $0x138] sm:$0xff] %v435_v38  ;;  %v437_v48 = vadd.f32 0.5, %v373_v39  ;;  %v375_v49 = vmul.f32 0.5, %v771_v42  ;;  %784 = vtanh.f32 %v254_v30 }
  0x5f   : > { %v775_v52 = vpop.eup %774  ;;  %500 = vst [vmem:[%s1042_s17 + $0x140] sm:$0xff] %v436_v43  ;;  %v438_v53 = vadd.f32 0.5, %v374_v44  ;;  %v376_v54 = vmul.f32 0.5, %v773_v47  ;;  %786 = vtanh.f32 %v255_v35 }
  0x60   : > { %v777_v57 = vpop.eup %776  ;;  %501 = vst [vmem:[%s1042_s17 + $0x148] sm:$0xff] %v437_v48  ;;  %v439_v58 = vadd.f32 0.5, %v375_v49  ;;  %v377_v59 = vmul.f32 0.5, %v775_v52  ;;  %788 = vtanh.f32 %v256_v40 }
  0x61   : > { %v779_v62 = vpop.eup %778  ;;  %502 = vst [vmem:[%s1042_s17 + $0x150] sm:$0xff] %v438_v53  ;;  %v440_v63 = vadd.f32 0.5, %v376_v54  ;;  %v378_v0 = vmul.f32 0.5, %v777_v57  ;;  %790 = vtanh.f32 %v257_v45 }
  0x62   : > { %v781_v3 = vpop.eup %780  ;;  %503 = vst [vmem:[%s1042_s17 + $0x158] sm:$0xff] %v439_v58  ;;  %v441_v4 = vadd.f32 0.5, %v377_v59  ;;  %v379_v5 = vmul.f32 0.5, %v779_v62  ;;  %792 = vtanh.f32 %v258_v50 }
  0x63   : > { %v783_v8 = vpop.eup %782  ;;  %504 = vst [vmem:[%s1042_s17 + $0x160] sm:$0xff] %v440_v63  ;;  %v442_v9 = vadd.f32 0.5, %v378_v0  ;;  %v380_v10 = vmul.f32 0.5, %v781_v3  ;;  %794 = vtanh.f32 %v259_v55 }
  0x64   : > { %v785_v13 = vpop.eup %784  ;;  %505 = vst [vmem:[%s1042_s17 + $0x168] sm:$0xff] %v441_v4  ;;  %v443_v14 = vadd.f32 0.5, %v379_v5  ;;  %v381_v15 = vmul.f32 0.5, %v783_v8  ;;  %796 = vtanh.f32 %v260_v60 }
  0x65   : > { %v787_v18 = vpop.eup %786  ;;  %506 = vst [vmem:[%s1042_s17 + $0x170] sm:$0xff] %v442_v9  ;;  %v444_v19 = vadd.f32 0.5, %v380_v10  ;;  %v382_v20 = vmul.f32 0.5, %v785_v13  ;;  %798 = vtanh.f32 %v261_v1 }
  0x66   : > { %v789_v22 = vpop.eup %788  ;;  %507 = vst [vmem:[%s1042_s17 + $0x178] sm:$0xff] %v443_v14  ;;  %v445_v23 = vadd.f32 0.5, %v381_v15  ;;  %v383_v24 = vmul.f32 0.5, %v787_v18  ;;  %800 = vtanh.f32 %v262_v6 }
  0x67   : > { %v791_v26 = vpop.eup %790  ;;  %508 = vst [vmem:[%s1042_s17 + $0x180] sm:$0xff] %v444_v19  ;;  %v446_v27 = vadd.f32 0.5, %v382_v20  ;;  %v384_v28 = vmul.f32 0.5, %v789_v22  ;;  %802 = vtanh.f32 %v263_v11 }
  0x68   : > { %v793_v30 = vpop.eup %792  ;;  %509 = vst [vmem:[%s1042_s17 + $0x188] sm:$0xff] %v445_v23  ;;  %v447_v31 = vadd.f32 0.5, %v383_v24  ;;  %v385_v32 = vmul.f32 0.5, %v791_v26  ;;  %804 = vtanh.f32 %v264_v16 }
  0x69   : > { %v795_v33 = vpop.eup %794  ;;  %510 = vst [vmem:[%s1042_s17 + $0x190] sm:$0xff] %v446_v27  ;;  %v448_v34 = vadd.f32 0.5, %v384_v28  ;;  %v386_v35 = vmul.f32 0.5, %v793_v30  ;;  %806 = vtanh.f32 %v265_v21 }
  0x6a   : > { %v797_v36 = vpop.eup %796  ;;  %511 = vst [vmem:[%s1042_s17 + $0x198] sm:$0xff] %v447_v31  ;;  %v449_v37 = vadd.f32 0.5, %v385_v32  ;;  %v387_v38 = vmul.f32 0.5, %v795_v33  ;;  %808 = vtanh.f32 %v266_v25 }
  0x6b   : > { %v799_v39 = vpop.eup %798  ;;  %512 = vst [vmem:[%s1042_s17 + $0x1a0] sm:$0xff] %v448_v34  ;;  %v450_v40 = vadd.f32 0.5, %v386_v35  ;;  %v388_v41 = vmul.f32 0.5, %v797_v36  ;;  %810 = vtanh.f32 %v267_v29 }
  0x6c   : > { %v801_v42 = vpop.eup %800  ;;  %513 = vst [vmem:[%s1042_s17 + $0x1a8] sm:$0xff] %v449_v37  ;;  %v451_v43 = vadd.f32 0.5, %v387_v38  ;;  %v389_v44 = vmul.f32 0.5, %v799_v39 }
  0x6d   : > { %v803_v45 = vpop.eup %802  ;;  %514 = vst [vmem:[%s1042_s17 + $0x1b0] sm:$0xff] %v450_v40  ;;  %v452_v46 = vadd.f32 0.5, %v388_v41  ;;  %v390_v47 = vmul.f32 0.5, %v801_v42 }
  0x6e   : > { %v805_v48 = vpop.eup %804  ;;  %515 = vst [vmem:[%s1042_s17 + $0x1b8] sm:$0xff] %v451_v43  ;;  %v453_v49 = vadd.f32 0.5, %v389_v44  ;;  %v391_v50 = vmul.f32 0.5, %v803_v45 }
  0x6f   : > { %v807_v51 = vpop.eup %806  ;;  %516 = vst [vmem:[%s1042_s17 + $0x1c0] sm:$0xff] %v452_v46  ;;  %v454_v52 = vadd.f32 0.5, %v390_v47  ;;  %v392_v53 = vmul.f32 0.5, %v805_v48 }
  0x70   : > { %v809_v54 = vpop.eup %808  ;;  %517 = vst [vmem:[%s1042_s17 + $0x1c8] sm:$0xff] %v453_v49  ;;  %v455_v55 = vadd.f32 0.5, %v391_v50  ;;  %v393_v56 = vmul.f32 0.5, %v807_v51 }
  0x71   : > { %v811_v57 = vpop.eup %810  ;;  %518 = vst [vmem:[%s1042_s17 + $0x1d0] sm:$0xff] %v454_v52  ;;  %v456_v58 = vadd.f32 0.5, %v392_v53  ;;  %v394_v59 = vmul.f32 0.5, %v809_v54 }
  0x72   : > { %519 = vst [vmem:[%s1042_s17 + $0x1d8] sm:$0xff] %v455_v55  ;;  %v457_v60 = vadd.f32 0.5, %v393_v56  ;;  %v395_v61 = vmul.f32 0.5, %v811_v57 }
  0x73   : > { %520 = vst [vmem:[%s1042_s17 + $0x1e0] sm:$0xff] %v456_v58  ;;  %v458_v62 = vadd.f32 0.5, %v394_v59 }
  0x74   : > { %521 = vst [vmem:[%s1042_s17 + $0x1e8] sm:$0xff] %v457_v60  ;;  %v459_v63 = vadd.f32 0.5, %v395_v61 }
  0x75   : > { %522 = vst [vmem:[%s1042_s17 + $0x1f0] sm:$0xff] %v458_v62 }
  0x76   : > { %523 = vst [vmem:[%s1042_s17 + $0x1f8] sm:$0xff] %v459_v63 }
  0x77   : > { %869 = shalt.err (!%p866_p4)
}
  0x78   : > { %s912_s16 = smov 1024   ;;  %s913_s20 = smov 64  }
  0x79   : > { %636 = dma.vmem_to_hbm [thread:$0]  (%p974_p11), %s539_s28, 8192, %s541_s29, %s525_s30, %s912_s16, %s912_s16, %s913_s20  }
  0x7a PF: > { %s555_s21 = sand.u32 1, %s896_s6   ;;  %p1195_p7 = scmp.ge.s32.totalorder %s908_s9, 2 }
  0x7b   : > { %s556_s22 = scalar_lea.sflag [#allocation4], %s555_s21 }
  0x7c   : > { %p643_p5 = pnand %p1195_p7, %p978_p12 }
  0x7e   : > { %p644_p8 = pneg %p643_p5 }
  0x80   : > { %891 = dma.done.wait (%p644_p8), %s556_s22, 8192  }
  0x81   : > { %893 = vsyncadd (%p644_p8), %s556_s22, 4294959104  ;;  %p14_p10 = scmp.ge.s32.totalorder %s949_s12, 4   ;;  %s1196_s6 = smov %s900_s7 }
  0x82   : > { %s1197_s7 = smov %s904_s8  ;;  %s1198_s8 = smov %s961_s15 }
  0x83   : > { %s1199_s9 = smov %s949_s12  ;;  %16 = sbr.rel (!%p14_p10) target bundleno = 5 (0x5), region = 69 }
  0x88   :  { %562 = vsyncpa [#allocation3], 1 }
  0x89   :  { %564 = vsyncpa [#allocation3 + $0x1], 1 }
  0x8a   :  { %565 = vsyncpa [#allocation4], 1 }
  0x8b   :  { %567 = vsyncpa [#allocation4 + $0x1], 1 }

</bundles_post_ra>
